<compile_context>
chip_gen: v6e
topology: v6e:2x2x1
jax: 0.10.0
libtpu: 0.0.40
codegen_flags: <defaults>
</compile_context>

<pallas_src>
import jax
import jax.numpy as jnp
from jax.experimental import pallas as pl
from jax.experimental.pallas import tpu as pltpu

CLASS_NUM = 2
EMBED_SIZE = 5
HIDDEN_SIZE = 6
LAYER_NUM = 3


def _rnn_kernel(x_ref, wih_ref, whh_ref, b_ref, wlin_ref, blin_ref, out_ref):
    """Full multi-layer Elman RNN recurrence + linear head, all in values.

    x_ref:    (T*B, H)  layer-0 input, time-major flattened, embed zero-padded
    wih_ref:  (L, H, H) input->hidden weights, pre-transposed (in, out)
    whh_ref:  (L, H, H) hidden->hidden weights, pre-transposed (in, out)
    b_ref:    (L, 1, H) pre-summed biases (b_ih + b_hh)
    wlin_ref: (H, C)    linear weight, pre-transposed (in, out)
    blin_ref: (1, C)
    out_ref:  (B, C)
    """
    L = wih_ref.shape[0]
    TB = x_ref.shape[0]
    B = out_ref.shape[0]
    T = TB // B

    layer_in = x_ref[...]                      # (T*B, H) value, read once
    h = jnp.zeros((B, HIDDEN_SIZE), jnp.float32)

    for l in range(L):
        w_ih = wih_ref[l]                      # (H, H)
        w_hh = whh_ref[l]                      # (H, H)
        b = b_ref[l]                           # (1, H)

        # Hoisted input projection: one matmul covering every timestep.
        proj = (jnp.dot(layer_in, w_ih, preferred_element_type=jnp.float32)
                + b)                           # (T*B, H)

        h = jnp.zeros((B, HIDDEN_SIZE), jnp.float32)  # h_0 = 0 per layer
        last_layer = (l == L - 1)
        outs = []
        for t in range(T):                     # short, fully unrolled; h is SSA
            h = jnp.tanh(
                proj[t * B:(t + 1) * B, :]
                + jnp.dot(h, w_hh, preferred_element_type=jnp.float32))
            if not last_layer:
                outs.append(h)
        if not last_layer:
            # Next layer's input, materialized once (time-major ordering kept).
            layer_in = jnp.concatenate(outs, axis=0)   # (T*B, H)

    # hidden[-1] -> final hidden state of last layer, then Linear head.
    out_ref[...] = (
        jnp.dot(h, wlin_ref[...], preferred_element_type=jnp.float32)
        + blin_ref[...])


def multilayer_rnn_forward(x, params):
    """x: (B, T, E) float32.  Returns (B, CLASS_NUM) float32."""
    B, T, E = x.shape
    H = HIDDEN_SIZE
    C = CLASS_NUM
    L = LAYER_NUM

    # Zero-pad embed axis to hidden size so every layer has input width H,
    # then lay out time-major & flattened: row block t*B:(t+1)*B == timestep t.
    x_pad = jnp.pad(x, ((0, 0), (0, 0), (0, H - E)))            # (B, T, H)
    x_tb = jnp.transpose(x_pad, (1, 0, 2)).reshape(T * B, H)    # (T*B, H)

    # Stack + transpose parameters into uniform shapes; pre-sum biases.
    wih_t = jnp.stack(
        [jnp.pad(params["w_ih"][0].T, ((0, H - E), (0, 0)))]
        + [params["w_ih"][l].T for l in range(1, L)], axis=0)        # (L, H, H)
    whh_t = jnp.stack([params["w_hh"][l].T for l in range(L)], 0)    # (L, H, H)
    b = jnp.stack(
        [(params["b_ih"][l] + params["b_hh"][l])[None, :] for l in range(L)],
        axis=0)                                                      # (L, 1, H)
    wlin_t = params["w_lin"].T                                       # (H, C)
    blin = params["b_lin"][None, :]                                  # (1, C)

    vmem = pl.BlockSpec(memory_space=pltpu.MemorySpace.VMEM)
    return pl.pallas_call(
        _rnn_kernel,
        out_shape=jax.ShapeDtypeStruct((B, C), jnp.float32),
        in_specs=[vmem] * 6,
        out_specs=vmem,
    )(x_tb, wih_t, whh_t, b, wlin_t, blin)


def _init_params(key):
    """Deterministic init matching nn.RNN / nn.Linear parameter shapes."""
    H, E, C, L = HIDDEN_SIZE, EMBED_SIZE, CLASS_NUM, LAYER_NUM
    bound = 1.0 / jnp.sqrt(H)
    keys = jax.random.split(key, 4 * L + 2)
    params = {"w_ih": [], "w_hh": [], "b_ih": [], "b_hh": []}
    for l in range(L):
        in_dim = E if l == 0 else H
        params["w_ih"].append(
            jax.random.uniform(keys[4 * l + 0], (H, in_dim), jnp.float32, -bound, bound))
        params["w_hh"].append(
            jax.random.uniform(keys[4 * l + 1], (H, H), jnp.float32, -bound, bound))
        params["b_ih"].append(
            jax.random.uniform(keys[4 * l + 2], (H,), jnp.float32, -bound, bound))
        params["b_hh"].append(
            jax.random.uniform(keys[4 * l + 3], (H,), jnp.float32, -bound, bound))
    lbound = 1.0 / jnp.sqrt(H)
    params["w_lin"] = jax.random.uniform(keys[-2], (C, H), jnp.float32, -lbound, lbound)
    params["b_lin"] = jax.random.uniform(keys[-1], (C,), jnp.float32, -lbound, lbound)
    return params


def _reference(x, params):
    """Pure-JAX reference mirroring torch nn.RNN(batch_first=True) + Linear."""
    B, T, _ = x.shape
    layer_in = x
    h = None
    for l in range(LAYER_NUM):
        w_ih, w_hh = params["w_ih"][l], params["w_hh"][l]
        b_ih, b_hh = params["b_ih"][l], params["b_hh"][l]
        h = jnp.zeros((B, HIDDEN_SIZE), jnp.float32)
        outs = []
        for t in range(T):
            h = jnp.tanh(layer_in[:, t, :] @ w_ih.T + b_ih + h @ w_hh.T + b_hh)
            outs.append(h)
        layer_in = jnp.stack(outs, axis=1)
    return h @ params["w_lin"].T + params["b_lin"]


if __name__ == "__main__":
    key = jax.random.PRNGKey(0)
    k_param, k_x = jax.random.split(key)
    params = _init_params(k_param)

    B, T = 2, 8
    x = jax.random.normal(k_x, (B, T, EMBED_SIZE), jnp.float32)

    out = multilayer_rnn_forward(x, params)
    out = jax.block_until_ready(out)

    ref = _reference(x, params)
    assert out.shape == (B, CLASS_NUM)
    assert jnp.allclose(out, ref, atol=1e-5, rtol=1e-5), (out, ref)
    print("KERNEL_OK")
</pallas_src>

<mosaic_0001>
module attributes {stable_mosaic.version = 11 : i64} {
  func.func @_rnn_kernel(%arg0: memref<16x6xf32, #tpu.memory_space<vmem>>, %arg1: memref<3x6x6xf32, #tpu.memory_space<vmem>>, %arg2: memref<3x6x6xf32, #tpu.memory_space<vmem>>, %arg3: memref<3x1x6xf32, #tpu.memory_space<vmem>>, %arg4: memref<6x2xf32, #tpu.memory_space<vmem>>, %arg5: memref<1x2xf32, #tpu.memory_space<vmem>>, %arg6: memref<2x2xf32, #tpu.memory_space<vmem>>) attributes {dimension_semantics = [], scalar_prefetch = 0 : i64, scratch_operands = 0 : i64, tpu.core_type = #tpu.core_type<tc>} {
    %c0 = arith.constant 0 : index
    %c0_0 = arith.constant 0 : index
    %0 = vector.load %arg0[%c0, %c0_0] : memref<16x6xf32, #tpu.memory_space<vmem>>, vector<16x6xf32>
    %c0_1 = arith.constant 0 : index
    %c0_2 = arith.constant 0 : index
    %c0_3 = arith.constant 0 : index
    %1 = vector.load %arg1[%c0_1, %c0_2, %c0_3] : memref<3x6x6xf32, #tpu.memory_space<vmem>>, vector<1x6x6xf32>
    %2 = vector.shape_cast %1 : vector<1x6x6xf32> to vector<6x6xf32>
    %c0_4 = arith.constant 0 : index
    %c0_5 = arith.constant 0 : index
    %c0_6 = arith.constant 0 : index
    %3 = vector.load %arg2[%c0_4, %c0_5, %c0_6] : memref<3x6x6xf32, #tpu.memory_space<vmem>>, vector<1x6x6xf32>
    %4 = vector.shape_cast %3 : vector<1x6x6xf32> to vector<6x6xf32>
    %c0_7 = arith.constant 0 : index
    %c0_8 = arith.constant 0 : index
    %c0_9 = arith.constant 0 : index
    %5 = vector.load %arg3[%c0_7, %c0_8, %c0_9] : memref<3x1x6xf32, #tpu.memory_space<vmem>>, vector<1x1x6xf32>
    %6 = vector.shape_cast %5 : vector<1x1x6xf32> to vector<1x6xf32>
    %cst = arith.constant dense<0.000000e+00> : vector<16x6xf32>
    %7 = tpu.matmul %0, %2, %cst {dimension_numbers = #tpu.dot_dimension_numbers<[1], [0], [0], [1], [0, 0, 1, 1], [], []>} : vector<16x6xf32>, vector<6x6xf32>, vector<16x6xf32> -> vector<16x6xf32>
    %8 = vector.broadcast %6 : vector<1x6xf32> to vector<16x6xf32>
    %9 = arith.addf %7, %8 : vector<16x6xf32>
    %cst_10 = arith.constant 0.000000e+00 : f32
    %10 = vector.broadcast %cst_10 : f32 to vector<2x6xf32>
    %11 = vector.extract_strided_slice %9 {offsets = [0, 0], sizes = [2, 6], strides = [1, 1]} : vector<16x6xf32> to vector<2x6xf32>
    %cst_11 = arith.constant dense<0.000000e+00> : vector<2x6xf32>
    %12 = tpu.matmul %10, %4, %cst_11 {dimension_numbers = #tpu.dot_dimension_numbers<[1], [0], [0], [1], [0, 0, 1, 1], [], []>} : vector<2x6xf32>, vector<6x6xf32>, vector<2x6xf32> -> vector<2x6xf32>
    %13 = arith.addf %11, %12 : vector<2x6xf32>
    %14 = math.tanh %13 : vector<2x6xf32>
    %15 = vector.extract_strided_slice %9 {offsets = [2, 0], sizes = [2, 6], strides = [1, 1]} : vector<16x6xf32> to vector<2x6xf32>
    %cst_12 = arith.constant dense<0.000000e+00> : vector<2x6xf32>
    %16 = tpu.matmul %14, %4, %cst_12 {dimension_numbers = #tpu.dot_dimension_numbers<[1], [0], [0], [1], [0, 0, 1, 1], [], []>} : vector<2x6xf32>, vector<6x6xf32>, vector<2x6xf32> -> vector<2x6xf32>
    %17 = arith.addf %15, %16 : vector<2x6xf32>
    %18 = math.tanh %17 : vector<2x6xf32>
    %19 = vector.extract_strided_slice %9 {offsets = [4, 0], sizes = [2, 6], strides = [1, 1]} : vector<16x6xf32> to vector<2x6xf32>
    %cst_13 = arith.constant dense<0.000000e+00> : vector<2x6xf32>
    %20 = tpu.matmul %18, %4, %cst_13 {dimension_numbers = #tpu.dot_dimension_numbers<[1], [0], [0], [1], [0, 0, 1, 1], [], []>} : vector<2x6xf32>, vector<6x6xf32>, vector<2x6xf32> -> vector<2x6xf32>
    %21 = arith.addf %19, %20 : vector<2x6xf32>
    %22 = math.tanh %21 : vector<2x6xf32>
    %23 = vector.extract_strided_slice %9 {offsets = [6, 0], sizes = [2, 6], strides = [1, 1]} : vector<16x6xf32> to vector<2x6xf32>
    %cst_14 = arith.constant dense<0.000000e+00> : vector<2x6xf32>
    %24 = tpu.matmul %22, %4, %cst_14 {dimension_numbers = #tpu.dot_dimension_numbers<[1], [0], [0], [1], [0, 0, 1, 1], [], []>} : vector<2x6xf32>, vector<6x6xf32>, vector<2x6xf32> -> vector<2x6xf32>
    %25 = arith.addf %23, %24 : vector<2x6xf32>
    %26 = math.tanh %25 : vector<2x6xf32>
    %27 = vector.extract_strided_slice %9 {offsets = [8, 0], sizes = [2, 6], strides = [1, 1]} : vector<16x6xf32> to vector<2x6xf32>
    %cst_15 = arith.constant dense<0.000000e+00> : vector<2x6xf32>
    %28 = tpu.matmul %26, %4, %cst_15 {dimension_numbers = #tpu.dot_dimension_numbers<[1], [0], [0], [1], [0, 0, 1, 1], [], []>} : vector<2x6xf32>, vector<6x6xf32>, vector<2x6xf32> -> vector<2x6xf32>
    %29 = arith.addf %27, %28 : vector<2x6xf32>
    %30 = math.tanh %29 : vector<2x6xf32>
    %31 = vector.extract_strided_slice %9 {offsets = [10, 0], sizes = [2, 6], strides = [1, 1]} : vector<16x6xf32> to vector<2x6xf32>
    %cst_16 = arith.constant dense<0.000000e+00> : vector<2x6xf32>
    %32 = tpu.matmul %30, %4, %cst_16 {dimension_numbers = #tpu.dot_dimension_numbers<[1], [0], [0], [1], [0, 0, 1, 1], [], []>} : vector<2x6xf32>, vector<6x6xf32>, vector<2x6xf32> -> vector<2x6xf32>
    %33 = arith.addf %31, %32 : vector<2x6xf32>
    %34 = math.tanh %33 : vector<2x6xf32>
    %35 = vector.extract_strided_slice %9 {offsets = [12, 0], sizes = [2, 6], strides = [1, 1]} : vector<16x6xf32> to vector<2x6xf32>
    %cst_17 = arith.constant dense<0.000000e+00> : vector<2x6xf32>
    %36 = tpu.matmul %34, %4, %cst_17 {dimension_numbers = #tpu.dot_dimension_numbers<[1], [0], [0], [1], [0, 0, 1, 1], [], []>} : vector<2x6xf32>, vector<6x6xf32>, vector<2x6xf32> -> vector<2x6xf32>
    %37 = arith.addf %35, %36 : vector<2x6xf32>
    %38 = math.tanh %37 : vector<2x6xf32>
    %39 = vector.extract_strided_slice %9 {offsets = [14, 0], sizes = [2, 6], strides = [1, 1]} : vector<16x6xf32> to vector<2x6xf32>
    %cst_18 = arith.constant dense<0.000000e+00> : vector<2x6xf32>
    %40 = tpu.matmul %38, %4, %cst_18 {dimension_numbers = #tpu.dot_dimension_numbers<[1], [0], [0], [1], [0, 0, 1, 1], [], []>} : vector<2x6xf32>, vector<6x6xf32>, vector<2x6xf32> -> vector<2x6xf32>
    %41 = arith.addf %39, %40 : vector<2x6xf32>
    %42 = math.tanh %41 : vector<2x6xf32>
    %43 = tpu.concatenate %14, %18, %22, %26, %30, %34, %38, %42 in 0 : vector<2x6xf32>, vector<2x6xf32>, vector<2x6xf32>, vector<2x6xf32>, vector<2x6xf32>, vector<2x6xf32>, vector<2x6xf32>, vector<2x6xf32> -> vector<16x6xf32>
    %c1 = arith.constant 1 : index
    %c0_19 = arith.constant 0 : index
    %c0_20 = arith.constant 0 : index
    %44 = vector.load %arg1[%c1, %c0_19, %c0_20] : memref<3x6x6xf32, #tpu.memory_space<vmem>>, vector<1x6x6xf32>
    %45 = vector.shape_cast %44 : vector<1x6x6xf32> to vector<6x6xf32>
    %c1_21 = arith.constant 1 : index
    %c0_22 = arith.constant 0 : index
    %c0_23 = arith.constant 0 : index
    %46 = vector.load %arg2[%c1_21, %c0_22, %c0_23] : memref<3x6x6xf32, #tpu.memory_space<vmem>>, vector<1x6x6xf32>
    %47 = vector.shape_cast %46 : vector<1x6x6xf32> to vector<6x6xf32>
    %c1_24 = arith.constant 1 : index
    %c0_25 = arith.constant 0 : index
    %c0_26 = arith.constant 0 : index
    %48 = vector.load %arg3[%c1_24, %c0_25, %c0_26] : memref<3x1x6xf32, #tpu.memory_space<vmem>>, vector<1x1x6xf32>
    %49 = vector.shape_cast %48 : vector<1x1x6xf32> to vector<1x6xf32>
    %cst_27 = arith.constant dense<0.000000e+00> : vector<16x6xf32>
    %50 = tpu.matmul %43, %45, %cst_27 {dimension_numbers = #tpu.dot_dimension_numbers<[1], [0], [0], [1], [0, 0, 1, 1], [], []>} : vector<16x6xf32>, vector<6x6xf32>, vector<16x6xf32> -> vector<16x6xf32>
    %51 = vector.broadcast %49 : vector<1x6xf32> to vector<16x6xf32>
    %52 = arith.addf %50, %51 : vector<16x6xf32>
    %cst_28 = arith.constant 0.000000e+00 : f32
    %53 = vector.broadcast %cst_28 : f32 to vector<2x6xf32>
    %54 = vector.extract_strided_slice %52 {offsets = [0, 0], sizes = [2, 6], strides = [1, 1]} : vector<16x6xf32> to vector<2x6xf32>
    %cst_29 = arith.constant dense<0.000000e+00> : vector<2x6xf32>
    %55 = tpu.matmul %53, %47, %cst_29 {dimension_numbers = #tpu.dot_dimension_numbers<[1], [0], [0], [1], [0, 0, 1, 1], [], []>} : vector<2x6xf32>, vector<6x6xf32>, vector<2x6xf32> -> vector<2x6xf32>
    %56 = arith.addf %54, %55 : vector<2x6xf32>
    %57 = math.tanh %56 : vector<2x6xf32>
    %58 = vector.extract_strided_slice %52 {offsets = [2, 0], sizes = [2, 6], strides = [1, 1]} : vector<16x6xf32> to vector<2x6xf32>
    %cst_30 = arith.constant dense<0.000000e+00> : vector<2x6xf32>
    %59 = tpu.matmul %57, %47, %cst_30 {dimension_numbers = #tpu.dot_dimension_numbers<[1], [0], [0], [1], [0, 0, 1, 1], [], []>} : vector<2x6xf32>, vector<6x6xf32>, vector<2x6xf32> -> vector<2x6xf32>
    %60 = arith.addf %58, %59 : vector<2x6xf32>
    %61 = math.tanh %60 : vector<2x6xf32>
    %62 = vector.extract_strided_slice %52 {offsets = [4, 0], sizes = [2, 6], strides = [1, 1]} : vector<16x6xf32> to vector<2x6xf32>
    %cst_31 = arith.constant dense<0.000000e+00> : vector<2x6xf32>
    %63 = tpu.matmul %61, %47, %cst_31 {dimension_numbers = #tpu.dot_dimension_numbers<[1], [0], [0], [1], [0, 0, 1, 1], [], []>} : vector<2x6xf32>, vector<6x6xf32>, vector<2x6xf32> -> vector<2x6xf32>
    %64 = arith.addf %62, %63 : vector<2x6xf32>
    %65 = math.tanh %64 : vector<2x6xf32>
    %66 = vector.extract_strided_slice %52 {offsets = [6, 0], sizes = [2, 6], strides = [1, 1]} : vector<16x6xf32> to vector<2x6xf32>
    %cst_32 = arith.constant dense<0.000000e+00> : vector<2x6xf32>
    %67 = tpu.matmul %65, %47, %cst_32 {dimension_numbers = #tpu.dot_dimension_numbers<[1], [0], [0], [1], [0, 0, 1, 1], [], []>} : vector<2x6xf32>, vector<6x6xf32>, vector<2x6xf32> -> vector<2x6xf32>
    %68 = arith.addf %66, %67 : vector<2x6xf32>
    %69 = math.tanh %68 : vector<2x6xf32>
    %70 = vector.extract_strided_slice %52 {offsets = [8, 0], sizes = [2, 6], strides = [1, 1]} : vector<16x6xf32> to vector<2x6xf32>
    %cst_33 = arith.constant dense<0.000000e+00> : vector<2x6xf32>
    %71 = tpu.matmul %69, %47, %cst_33 {dimension_numbers = #tpu.dot_dimension_numbers<[1], [0], [0], [1], [0, 0, 1, 1], [], []>} : vector<2x6xf32>, vector<6x6xf32>, vector<2x6xf32> -> vector<2x6xf32>
    %72 = arith.addf %70, %71 : vector<2x6xf32>
    %73 = math.tanh %72 : vector<2x6xf32>
    %74 = vector.extract_strided_slice %52 {offsets = [10, 0], sizes = [2, 6], strides = [1, 1]} : vector<16x6xf32> to vector<2x6xf32>
    %cst_34 = arith.constant dense<0.000000e+00> : vector<2x6xf32>
    %75 = tpu.matmul %73, %47, %cst_34 {dimension_numbers = #tpu.dot_dimension_numbers<[1], [0], [0], [1], [0, 0, 1, 1], [], []>} : vector<2x6xf32>, vector<6x6xf32>, vector<2x6xf32> -> vector<2x6xf32>
    %76 = arith.addf %74, %75 : vector<2x6xf32>
    %77 = math.tanh %76 : vector<2x6xf32>
    %78 = vector.extract_strided_slice %52 {offsets = [12, 0], sizes = [2, 6], strides = [1, 1]} : vector<16x6xf32> to vector<2x6xf32>
    %cst_35 = arith.constant dense<0.000000e+00> : vector<2x6xf32>
    %79 = tpu.matmul %77, %47, %cst_35 {dimension_numbers = #tpu.dot_dimension_numbers<[1], [0], [0], [1], [0, 0, 1, 1], [], []>} : vector<2x6xf32>, vector<6x6xf32>, vector<2x6xf32> -> vector<2x6xf32>
    %80 = arith.addf %78, %79 : vector<2x6xf32>
    %81 = math.tanh %80 : vector<2x6xf32>
    %82 = vector.extract_strided_slice %52 {offsets = [14, 0], sizes = [2, 6], strides = [1, 1]} : vector<16x6xf32> to vector<2x6xf32>
    %cst_36 = arith.constant dense<0.000000e+00> : vector<2x6xf32>
    %83 = tpu.matmul %81, %47, %cst_36 {dimension_numbers = #tpu.dot_dimension_numbers<[1], [0], [0], [1], [0, 0, 1, 1], [], []>} : vector<2x6xf32>, vector<6x6xf32>, vector<2x6xf32> -> vector<2x6xf32>
    %84 = arith.addf %82, %83 : vector<2x6xf32>
    %85 = math.tanh %84 : vector<2x6xf32>
    %86 = tpu.concatenate %57, %61, %65, %69, %73, %77, %81, %85 in 0 : vector<2x6xf32>, vector<2x6xf32>, vector<2x6xf32>, vector<2x6xf32>, vector<2x6xf32>, vector<2x6xf32>, vector<2x6xf32>, vector<2x6xf32> -> vector<16x6xf32>
    %c2 = arith.constant 2 : index
    %c0_37 = arith.constant 0 : index
    %c0_38 = arith.constant 0 : index
    %87 = vector.load %arg1[%c2, %c0_37, %c0_38] : memref<3x6x6xf32, #tpu.memory_space<vmem>>, vector<1x6x6xf32>
    %88 = vector.shape_cast %87 : vector<1x6x6xf32> to vector<6x6xf32>
    %c2_39 = arith.constant 2 : index
    %c0_40 = arith.constant 0 : index
    %c0_41 = arith.constant 0 : index
    %89 = vector.load %arg2[%c2_39, %c0_40, %c0_41] : memref<3x6x6xf32, #tpu.memory_space<vmem>>, vector<1x6x6xf32>
    %90 = vector.shape_cast %89 : vector<1x6x6xf32> to vector<6x6xf32>
    %c2_42 = arith.constant 2 : index
    %c0_43 = arith.constant 0 : index
    %c0_44 = arith.constant 0 : index
    %91 = vector.load %arg3[%c2_42, %c0_43, %c0_44] : memref<3x1x6xf32, #tpu.memory_space<vmem>>, vector<1x1x6xf32>
    %92 = vector.shape_cast %91 : vector<1x1x6xf32> to vector<1x6xf32>
    %cst_45 = arith.constant dense<0.000000e+00> : vector<16x6xf32>
    %93 = tpu.matmul %86, %88, %cst_45 {dimension_numbers = #tpu.dot_dimension_numbers<[1], [0], [0], [1], [0, 0, 1, 1], [], []>} : vector<16x6xf32>, vector<6x6xf32>, vector<16x6xf32> -> vector<16x6xf32>
    %94 = vector.broadcast %92 : vector<1x6xf32> to vector<16x6xf32>
    %95 = arith.addf %93, %94 : vector<16x6xf32>
    %cst_46 = arith.constant 0.000000e+00 : f32
    %96 = vector.broadcast %cst_46 : f32 to vector<2x6xf32>
    %97 = vector.extract_strided_slice %95 {offsets = [0, 0], sizes = [2, 6], strides = [1, 1]} : vector<16x6xf32> to vector<2x6xf32>
    %cst_47 = arith.constant dense<0.000000e+00> : vector<2x6xf32>
    %98 = tpu.matmul %96, %90, %cst_47 {dimension_numbers = #tpu.dot_dimension_numbers<[1], [0], [0], [1], [0, 0, 1, 1], [], []>} : vector<2x6xf32>, vector<6x6xf32>, vector<2x6xf32> -> vector<2x6xf32>
    %99 = arith.addf %97, %98 : vector<2x6xf32>
    %100 = math.tanh %99 : vector<2x6xf32>
    %101 = vector.extract_strided_slice %95 {offsets = [2, 0], sizes = [2, 6], strides = [1, 1]} : vector<16x6xf32> to vector<2x6xf32>
    %cst_48 = arith.constant dense<0.000000e+00> : vector<2x6xf32>
    %102 = tpu.matmul %100, %90, %cst_48 {dimension_numbers = #tpu.dot_dimension_numbers<[1], [0], [0], [1], [0, 0, 1, 1], [], []>} : vector<2x6xf32>, vector<6x6xf32>, vector<2x6xf32> -> vector<2x6xf32>
    %103 = arith.addf %101, %102 : vector<2x6xf32>
    %104 = math.tanh %103 : vector<2x6xf32>
    %105 = vector.extract_strided_slice %95 {offsets = [4, 0], sizes = [2, 6], strides = [1, 1]} : vector<16x6xf32> to vector<2x6xf32>
    %cst_49 = arith.constant dense<0.000000e+00> : vector<2x6xf32>
    %106 = tpu.matmul %104, %90, %cst_49 {dimension_numbers = #tpu.dot_dimension_numbers<[1], [0], [0], [1], [0, 0, 1, 1], [], []>} : vector<2x6xf32>, vector<6x6xf32>, vector<2x6xf32> -> vector<2x6xf32>
    %107 = arith.addf %105, %106 : vector<2x6xf32>
    %108 = math.tanh %107 : vector<2x6xf32>
    %109 = vector.extract_strided_slice %95 {offsets = [6, 0], sizes = [2, 6], strides = [1, 1]} : vector<16x6xf32> to vector<2x6xf32>
    %cst_50 = arith.constant dense<0.000000e+00> : vector<2x6xf32>
    %110 = tpu.matmul %108, %90, %cst_50 {dimension_numbers = #tpu.dot_dimension_numbers<[1], [0], [0], [1], [0, 0, 1, 1], [], []>} : vector<2x6xf32>, vector<6x6xf32>, vector<2x6xf32> -> vector<2x6xf32>
    %111 = arith.addf %109, %110 : vector<2x6xf32>
    %112 = math.tanh %111 : vector<2x6xf32>
    %113 = vector.extract_strided_slice %95 {offsets = [8, 0], sizes = [2, 6], strides = [1, 1]} : vector<16x6xf32> to vector<2x6xf32>
    %cst_51 = arith.constant dense<0.000000e+00> : vector<2x6xf32>
    %114 = tpu.matmul %112, %90, %cst_51 {dimension_numbers = #tpu.dot_dimension_numbers<[1], [0], [0], [1], [0, 0, 1, 1], [], []>} : vector<2x6xf32>, vector<6x6xf32>, vector<2x6xf32> -> vector<2x6xf32>
    %115 = arith.addf %113, %114 : vector<2x6xf32>
    %116 = math.tanh %115 : vector<2x6xf32>
    %117 = vector.extract_strided_slice %95 {offsets = [10, 0], sizes = [2, 6], strides = [1, 1]} : vector<16x6xf32> to vector<2x6xf32>
    %cst_52 = arith.constant dense<0.000000e+00> : vector<2x6xf32>
    %118 = tpu.matmul %116, %90, %cst_52 {dimension_numbers = #tpu.dot_dimension_numbers<[1], [0], [0], [1], [0, 0, 1, 1], [], []>} : vector<2x6xf32>, vector<6x6xf32>, vector<2x6xf32> -> vector<2x6xf32>
    %119 = arith.addf %117, %118 : vector<2x6xf32>
    %120 = math.tanh %119 : vector<2x6xf32>
    %121 = vector.extract_strided_slice %95 {offsets = [12, 0], sizes = [2, 6], strides = [1, 1]} : vector<16x6xf32> to vector<2x6xf32>
    %cst_53 = arith.constant dense<0.000000e+00> : vector<2x6xf32>
    %122 = tpu.matmul %120, %90, %cst_53 {dimension_numbers = #tpu.dot_dimension_numbers<[1], [0], [0], [1], [0, 0, 1, 1], [], []>} : vector<2x6xf32>, vector<6x6xf32>, vector<2x6xf32> -> vector<2x6xf32>
    %123 = arith.addf %121, %122 : vector<2x6xf32>
    %124 = math.tanh %123 : vector<2x6xf32>
    %125 = vector.extract_strided_slice %95 {offsets = [14, 0], sizes = [2, 6], strides = [1, 1]} : vector<16x6xf32> to vector<2x6xf32>
    %cst_54 = arith.constant dense<0.000000e+00> : vector<2x6xf32>
    %126 = tpu.matmul %124, %90, %cst_54 {dimension_numbers = #tpu.dot_dimension_numbers<[1], [0], [0], [1], [0, 0, 1, 1], [], []>} : vector<2x6xf32>, vector<6x6xf32>, vector<2x6xf32> -> vector<2x6xf32>
    %127 = arith.addf %125, %126 : vector<2x6xf32>
    %128 = math.tanh %127 : vector<2x6xf32>
    %c0_55 = arith.constant 0 : index
    %c0_56 = arith.constant 0 : index
    %129 = vector.load %arg4[%c0_55, %c0_56] : memref<6x2xf32, #tpu.memory_space<vmem>>, vector<6x2xf32>
    %cst_57 = arith.constant dense<0.000000e+00> : vector<2x2xf32>
    %130 = tpu.matmul %128, %129, %cst_57 {dimension_numbers = #tpu.dot_dimension_numbers<[1], [0], [0], [1], [0, 0, 1, 1], [], []>} : vector<2x6xf32>, vector<6x2xf32>, vector<2x2xf32> -> vector<2x2xf32>
    %c0_58 = arith.constant 0 : index
    %c0_59 = arith.constant 0 : index
    %131 = vector.load %arg5[%c0_58, %c0_59] : memref<1x2xf32, #tpu.memory_space<vmem>>, vector<1x2xf32>
    %132 = vector.broadcast %131 : vector<1x2xf32> to vector<2x2xf32>
    %133 = arith.addf %130, %132 : vector<2x2xf32>
    %c0_60 = arith.constant 0 : index
    %c0_61 = arith.constant 0 : index
    %134 = vector.load %arg6[%c0_60, %c0_61] : memref<2x2xf32, #tpu.memory_space<vmem>>, vector<2x2xf32>
    tpu.vector_store %arg6[%c0_60, %c0_61], %133 {strides = array<i32>} : memref<2x2xf32, #tpu.memory_space<vmem>>, vector<2x2xf32>,
    return
  }
}

</mosaic_0001>

<bundles_post_ra>
// kernel: tpu_custom_call.1
= control target key start
LH: loop header
LB: loop body
LE: loop exit
PB: predicated region body
PF: predicated region fallthrough
CT: control target
= control target key end

     0   :  { %11 = vsyncpa [#allocation3], 0  ;;  %s2950_s0 = inlined_call_operand.vmem [shape: f32[16,6], index: 0, kind: input, shape index: {}]   ;;  %s2951_s1 = inlined_call_operand.vmem [shape: f32[3,6,6], index: 1, kind: input, shape index: {}]   ;;  %s2952_s2 = inlined_call_operand.hbm [shape: f32[3,6,6], index: 2, kind: input, shape index: {}]   ;;  %s2953_s3 = inlined_call_operand.vmem [shape: f32[3,1,6], index: 3, kind: input, shape index: {}]   ;;  %s2954_s4 = inlined_call_operand.vmem [shape: f32[6,2], index: 4, kind: input, shape index: {}]   ;;  %s2955_s5 = inlined_call_operand.vmem [shape: f32[1,2], index: 5, kind: input, shape index: {}]   ;;  %s2956_s6 = inlined_call_operand.hbm [shape: f32[2,2], index: 6, kind: output, shape index: {}]  }
   0x1   :  { %12 = vsyncpa [#allocation4], 0  ;;  %s2676_s21 = smov [#allocation2]  }
   0x2   :  { %s22_s22 = sshll.u32 %s2676_s21, 4  ;;  %s23_s22 = int_to_ptr.vmem [resolvable:$true] %s22_s22 }
   0x3   :  { %s2640_s23 = scalar_lea.vmem %s23_s22, 384  ;;  %p2645_p1 = scmp.lt.s32.totalorder %s23_s22, %s23_s22 }
   0x4   :  { %p2641_p0 = scmp.ne.s32.totalorder %s23_s22, %s2640_s23  ;;  %p2646_p2 = scmp.lt.s32.totalorder %s2640_s23, %s2640_s23 }
   0x6   :  { %p2647_p3 = por %p2646_p2, %p2645_p1 }
   0x8   :  { %p2648_p4 = pnand %p2647_p3, %p2641_p0 }
   0xa   :  { %2651 = shalt.err (!%p2648_p4)
}
   0xb   :  { %s2677_s24 = smov 128   ;;  %s2678_s25 = smov 8  }
   0xc   :  { %28 = dma.hbm_to_vmem [thread:$0]  %s2952_s2, 384, %s23_s22, [#allocation3], %s2677_s24, %s2677_s24, %s2678_s25  }
   0xd   :  { %2672 = dma.done.wait [#allocation3], 384  }
   0xe   :  { %2673 = vsyncadd [#allocation3], 4294966912  ;;  %v2679_v0 = vmov 0.0   ;;  %vm2680_vm0 = vmmov 0   ;;  %vm56_vm1 = vcmask 1045504   ;;  %vm49_vm2 = vcmask 48128  }
   0xf   :  { %2443 = vmatprep.subr.mxu1 %v2679_v0  ;;  %2445 = vmatprep.mubr.msk.f32.mxu1 %vm2680_vm0, %v2679_v0  ;;  %v40_v1 = vld [vmem:[%s2951_s1] sm:$0x3f]  ;;  %v39_v3 = vld [vmem:[%s2950_s0 + $0x8] sm:$0xff]  ;;  %vm761_vm3 = vcmask 1041408   ;;  %vm763_vm4 = vcmask 1043456   ;;  %s2681_s20 = smov [#allocation5]  }
  0x10   :  { %v38_v2 = vld [vmem:[%s2950_s0] sm:$0xff]  ;;  %2438 = vmatprep.subr.msk.mxu0 %vm56_vm1, %v40_v1  ;;  %v2334_v53 = vld [vmem:[%s2951_s1 + $0x8] sm:$0x3f]  ;;  %s2306_s21 = sshll.u32 %s2681_s20, 4  ;;  %vm2298_vm5 = vcmask 9216   ;;  %s2307_s21 = int_to_ptr.vmem [resolvable:$true] %s2306_s21 }
  0x11   :  { %2440 = vmatprep.mubr.msk.f32.mxu0 %vm49_vm2, %v38_v2  ;;  %v2734_v4 = vld [vmem:[#allocation2] sm:$0x3f]  ;;  %2439 = vmatpush3.msk.msra.mxu0 %vm56_vm1, %v40_v1  ;;  %v2806_v54 = vld [vmem:[#allocation2 + $0x8] sm:$0x3f]  ;;  %p2657_p6 = scmp.lt.s32.totalorder %s2307_s21, %s2307_s21 }
  0x12   :  { %2444 = vmatpush3.msk.msra.mxu1 %vm56_vm1, %v2734_v4  ;;  %2441 = vmatmul.mubr.msk.f32.vlgmr.msra.gmra.mxu0 %vm49_vm2, %v39_v3  ;;  %v2315_v5 = vld [vmem:[%s2953_s3] ss:$0 sm:$0xff]  ;;  %v2336_v63 = vld [vmem:[%s2953_s3 + $0x1] ss:$0 sm:$0xff] }
  0x13   :  { %2446 = vmatmul.mubr.f32.vlgmr.msra.gmra.mxu1 %v2679_v0  ;;  %2448 = vmatprep.subr.mxu0 %v2679_v0 }
  0x14   :  { %2450 = vmatprep.mubr.msk.f32.mxu0 %vm2680_vm0, %v2679_v0  ;;  %2449 = vmatpush3.msk.msra.mxu0 %vm56_vm1, %v2734_v4 }
  0x15   :  { %2453 = vmatprep.subr.mxu1 %v2679_v0  ;;  %2455 = vmatprep.mubr.msk.f32.mxu1 %vm2680_vm0, %v2679_v0 }
  0x16   :  { %2454 = vmatpush3.msk.msra.mxu1 %vm56_vm1, %v2734_v4  ;;  %2458 = vmatprep.subr.mxu0 %v2679_v0 }
  0x17   :  { %2463 = vmatprep.subr.mxu1 %v2679_v0 }
  0xd2   :  { %v2442_v6 = vpop.f32.mrf.mxu0 }
  0xd3   :  { %v207_v7 = vpop.f32.mrf.mxu1  ;;  %v2756_v8 = vadd.f32 %v2442_v6, %v2315_v5 }
  0xd4   :  { %v126_v9 = vpop.f32.mrf.mxu0 }
  0xd5   :  { %v2447_v10 = vpop.f32.mrf.mxu1  ;;  %v127_v11 = vadd.f32 %v2315_v5, %v126_v9 }
  0xd7   :  { %v211_v12 = vadd.f32 %v207_v7, %v127_v11 }
  0xd9   :  { %2584 = vtanh.f32 %v211_v12 }
  0xe6   :  { %v2585_v13 = vpop.eup %2584 }
  0xe7   :  { %2451 = vmatmul.mubr.msk.f32.vlgmr.msra.gmra.mxu0 %vm49_vm2, %v2585_v13 }
  0xe8   :  { %2459 = vmatpush3.msk.msra.mxu0 %vm56_vm1, %v2734_v4  ;;  %2460 = vmatprep.mubr.msk.f32.mxu0 %vm2680_vm0, %v2679_v0 }
  0xe9   :  { %2468 = vmatprep.subr.mxu0 %v2679_v0 }
 0x1a7   :  { %v282_v14 = vpop.f32.mrf.mxu0 }
 0x1a8   :  { %v287_v15 = vrot.slane %v282_v14, 6 }
 0x1a9   :  { %v2452_v16 = vpop.f32.mrf.mxu0 }
 0x1aa   :  { %v289_v17 = vadd.f32 %v287_v15, %v127_v11 }
 0x1ac   :  { %2586 = vtanh.f32 %v289_v17 }
 0x1b9   :  { %v2587_v18 = vpop.eup %2586 }
 0x1ba   :  { %v292_v19 = vrot.slane %v2587_v18, 2  ;;  %v762_v25 = vsel %vm761_vm3, %v2585_v13, %v2587_v18 }
 0x1bc   :  { %2456 = vmatmul.mubr.msk.f32.vlgmr.msra.gmra.mxu1 %vm49_vm2, %v292_v19 }
 0x1bd   :  { %2464 = vmatpush3.msk.msra.mxu1 %vm56_vm1, %v2734_v4  ;;  %2465 = vmatprep.mubr.msk.f32.mxu1 %vm2680_vm0, %v2679_v0 }
 0x1be   :  { %2473 = vmatprep.subr.mxu1 %v2679_v0 }
 0x27c   :  { %v361_v20 = vpop.f32.mrf.mxu1 }
 0x27d   :  { %v366_v21 = vrot.slane %v361_v20, 4 }
 0x27e   :  { %v2457_v22 = vpop.f32.mrf.mxu1 }
 0x27f   :  { %v368_v23 = vadd.f32 %v366_v21, %v127_v11 }
 0x281   :  { %2588 = vtanh.f32 %v368_v23 }
 0x28e   :  { %v2589_v24 = vpop.eup %2588 }
 0x28f   :  { %v371_v26 = vrot.slane %v2589_v24, 4  ;;  %v764_v27 = vsel %vm763_vm4, %v762_v25, %v2589_v24 }
 0x291   :  { %2461 = vmatmul.mubr.msk.f32.vlgmr.msra.gmra.mxu0 %vm49_vm2, %v371_v26 }
 0x292   :  { %2469 = vmatpush3.msk.msra.mxu0 %vm56_vm1, %v2734_v4  ;;  %2470 = vmatprep.mubr.msk.f32.mxu0 %vm2680_vm0, %v2679_v0 }
 0x293   :  { %2478 = vmatprep.subr.mxu0 %v2679_v0 }
 0x351   :  { %v440_v28 = vpop.f32.mrf.mxu0 }
 0x352   :  { %v445_v29 = vrot.slane %v440_v28, 2 }
 0x353   :  { %v2462_v30 = vpop.f32.mrf.mxu0 }
 0x354   :  { %v447_v31 = vadd.f32 %v445_v29, %v127_v11 }
 0x356   :  { %2590 = vtanh.f32 %v447_v31 }
 0x363   :  { %v2591_v32 = vpop.eup %2590 }
 0x364   :  { %v450_v33 = vrot.slane %v2591_v32, 6  ;;  %v765_v34 = vsel %vm56_vm1, %v764_v27, %v2591_v32 }
 0x366   :  { %2466 = vmatmul.mubr.msk.f32.vlgmr.msra.gmra.mxu1 %vm49_vm2, %v450_v33 }
 0x367   :  { %2474 = vmatpush3.msk.msra.mxu1 %vm56_vm1, %v2734_v4  ;;  %2475 = vmatprep.mubr.msk.f32.mxu1 %vm2680_vm0, %v2679_v0 }
 0x368   :  { %2483 = vmatprep.subr.msk.mxu1 %vm56_vm1, %v2334_v53 }
 0x426   :  { %v519_v35 = vpop.f32.mrf.mxu1 }
 0x427   :  { %v523_v36 = vadd.f32 %v519_v35, %v2756_v8 }
 0x428   :  { %v2467_v37 = vpop.f32.mrf.mxu1 }
 0x429   :  { %2592 = vtanh.f32 %v523_v36 }
 0x436   :  { %v2593_v38 = vpop.eup %2592 }
 0x437   :  { %2471 = vmatmul.mubr.msk.f32.vlgmr.msra.gmra.mxu0 %vm49_vm2, %v2593_v38 }
 0x438   :  { %2479 = vmatpush3.msk.msra.mxu0 %vm56_vm1, %v2734_v4  ;;  %2480 = vmatprep.mubr.msk.f32.mxu0 %vm2680_vm0, %v2679_v0 }
 0x439   :  { %2488 = vmatprep.subr.mxu0 %v2679_v0 }
 0x4f7   :  { %v594_v39 = vpop.f32.mrf.mxu0 }
 0x4f8   :  { %v599_v40 = vrot.slane %v594_v39, 6 }
 0x4f9   :  { %v2472_v41 = vpop.f32.mrf.mxu0 }
 0x4fa   :  { %v601_v42 = vadd.f32 %v599_v40, %v2756_v8 }
 0x4fc   :  { %2594 = vtanh.f32 %v601_v42 }
 0x509   :  { %v2595_v43 = vpop.eup %2594 }
 0x50a   :  { %v604_v44 = vrot.slane %v2595_v43, 2  ;;  %v766_v50 = vsel %vm761_vm3, %v2593_v38, %v2595_v43 }
 0x50c   :  { %2476 = vmatmul.mubr.msk.f32.vlgmr.msra.gmra.mxu1 %vm49_vm2, %v604_v44 }
 0x50d   :  { %2485 = vmatprep.mubr.msk.f32.mxu1 %vm49_vm2, %v765_v34  ;;  %2484 = vmatpush3.msk.msra.mxu1 %vm56_vm1, %v2334_v53 }
 0x50e   :  { %2493 = vmatprep.subr.mxu1 %v2679_v0 }
 0x5cc   :  { %v673_v45 = vpop.f32.mrf.mxu1 }
 0x5cd   :  { %v678_v46 = vrot.slane %v673_v45, 4 }
 0x5ce   :  { %v2477_v47 = vpop.f32.mrf.mxu1 }
 0x5cf   :  { %v680_v48 = vadd.f32 %v678_v46, %v2756_v8  ;;  %v2355_v46 = vld [vmem:[%s2951_s1 + $0x10] sm:$0x3f] }
 0x5d0   :  { %v2878_v47 = vld [vmem:[#allocation2 + $0x10] sm:$0x3f] }
 0x5d1   :  { %2596 = vtanh.f32 %v680_v48 }
 0x5de   :  { %v2597_v49 = vpop.eup %2596 }
 0x5df   :  { %v683_v51 = vrot.slane %v2597_v49, 4  ;;  %v767_v52 = vsel %vm763_vm4, %v766_v50, %v2597_v49 }
 0x5e1   :  { %2481 = vmatmul.mubr.msk.f32.vlgmr.msra.gmra.mxu0 %vm49_vm2, %v683_v51 }
 0x5e2   :  { %2490 = vmatprep.mubr.msk.f32.mxu0 %vm2680_vm0, %v2679_v0  ;;  %2489 = vmatpush3.msk.msra.mxu0 %vm56_vm1, %v2806_v54 }
 0x5e3   :  { %2498 = vmatprep.subr.mxu0 %v2679_v0 }
 0x5e5   :  { %2491 = vmatmul.mubr.f32.vlgmr.msra.gmra.mxu0 %v2679_v0 }
 0x5e6   :  { %2499 = vmatpush3.msk.msra.mxu0 %vm56_vm1, %v2806_v54  ;;  %2500 = vmatprep.mubr.msk.f32.mxu0 %vm2680_vm0, %v2679_v0 }
 0x5e7   :  { %2508 = vmatprep.subr.mxu0 %v2679_v0 }
 0x6a1   :  { %v752_v55 = vpop.f32.mrf.mxu0 }
 0x6a2   :  { %v757_v56 = vrot.slane %v752_v55, 2 }
 0x6a3   :  { %v2482_v57 = vpop.f32.mrf.mxu0 }
 0x6a4   :  { %v759_v58 = vadd.f32 %v757_v56, %v2756_v8  ;;  %v2357_v56 = vld [vmem:[%s2953_s3 + $0x2] ss:$0 sm:$0xff] }
 0x6a5   :  { %v934_v61 = vpop.f32.mrf.mxu0 }
 0x6a6   :  { %2598 = vtanh.f32 %v759_v58 }
 0x6a7   :  { %v2492_v62 = vpop.f32.mrf.mxu0 }
 0x6b3   :  { %v2599_v59 = vpop.eup %2598 }
 0x6b4   :  { %v768_v60 = vsel %vm56_vm1, %v767_v52, %v2599_v59 }
 0x6b5   :  { %2486 = vmatmul.mubr.msk.f32.vlgmr.msra.gmra.mxu1 %vm49_vm2, %v768_v60 }
 0x6b6   :  { %2494 = vmatpush3.msk.msra.mxu1 %vm56_vm1, %v2806_v54  ;;  %2495 = vmatprep.mubr.msk.f32.mxu1 %vm2680_vm0, %v2679_v0 }
 0x6b7   :  { %2503 = vmatprep.subr.mxu1 %v2679_v0 }
 0x775   :  { %v2487_v1 = vpop.f32.mrf.mxu1 }
 0x776   :  { %v2828_v2 = vadd.f32 %v2487_v1, %v2336_v63 }
 0x777   :  { %v856_v3 = vpop.f32.mrf.mxu1 }
 0x778   :  { %v857_v4 = vadd.f32 %v2336_v63, %v856_v3 }
 0x77a   :  { %v938_v5 = vadd.f32 %v934_v61, %v857_v4 }
 0x77c   :  { %2600 = vtanh.f32 %v938_v5 }
 0x789   :  { %v2601_v6 = vpop.eup %2600 }
 0x78a   :  { %2496 = vmatmul.mubr.msk.f32.vlgmr.msra.gmra.mxu1 %vm49_vm2, %v2601_v6 }
 0x78b   :  { %2504 = vmatpush3.msk.msra.mxu1 %vm56_vm1, %v2806_v54  ;;  %2505 = vmatprep.mubr.msk.f32.mxu1 %vm2680_vm0, %v2679_v0 }
 0x78c   :  { %2513 = vmatprep.subr.mxu1 %v2679_v0 }
 0x84a   :  { %v1009_v7 = vpop.f32.mrf.mxu1 }
 0x84b   :  { %v1014_v8 = vrot.slane %v1009_v7, 6 }
 0x84c   :  { %v2497_v9 = vpop.f32.mrf.mxu1 }
 0x84d   :  { %v1016_v10 = vadd.f32 %v1014_v8, %v857_v4 }
 0x84f   :  { %2602 = vtanh.f32 %v1016_v10 }
 0x85c   :  { %v2603_v11 = vpop.eup %2602 }
 0x85d   :  { %v1019_v12 = vrot.slane %v2603_v11, 2  ;;  %v1488_v18 = vsel %vm761_vm3, %v2601_v6, %v2603_v11 }
 0x85f   :  { %2501 = vmatmul.mubr.msk.f32.vlgmr.msra.gmra.mxu0 %vm49_vm2, %v1019_v12 }
 0x860   :  { %2509 = vmatpush3.msk.msra.mxu0 %vm56_vm1, %v2806_v54  ;;  %2510 = vmatprep.mubr.msk.f32.mxu0 %vm2680_vm0, %v2679_v0 }
 0x861   :  { %2518 = vmatprep.subr.mxu0 %v2679_v0 }
 0x91f   :  { %v1088_v13 = vpop.f32.mrf.mxu0 }
 0x920   :  { %v1093_v14 = vrot.slane %v1088_v13, 4 }
 0x921   :  { %v2502_v15 = vpop.f32.mrf.mxu0 }
 0x922   :  { %v1095_v16 = vadd.f32 %v1093_v14, %v857_v4 }
 0x924   :  { %2604 = vtanh.f32 %v1095_v16 }
 0x931   :  { %v2605_v17 = vpop.eup %2604 }
 0x932   :  { %v1098_v19 = vrot.slane %v2605_v17, 4  ;;  %v1489_v20 = vsel %vm763_vm4, %v1488_v18, %v2605_v17 }
 0x934   :  { %2506 = vmatmul.mubr.msk.f32.vlgmr.msra.gmra.mxu1 %vm49_vm2, %v1098_v19 }
 0x935   :  { %2514 = vmatpush3.msk.msra.mxu1 %vm56_vm1, %v2806_v54  ;;  %2515 = vmatprep.mubr.msk.f32.mxu1 %vm2680_vm0, %v2679_v0 }
 0x936   :  { %2523 = vmatprep.subr.mxu1 %v2679_v0 }
 0x9f4   :  { %v1167_v21 = vpop.f32.mrf.mxu1 }
 0x9f5   :  { %v1172_v22 = vrot.slane %v1167_v21, 2 }
 0x9f6   :  { %v2507_v23 = vpop.f32.mrf.mxu1 }
 0x9f7   :  { %v1174_v24 = vadd.f32 %v1172_v22, %v857_v4 }
 0x9f9   :  { %2606 = vtanh.f32 %v1174_v24 }
 0xa06   :  { %v2607_v25 = vpop.eup %2606 }
 0xa07   :  { %v1177_v26 = vrot.slane %v2607_v25, 6  ;;  %v1490_v27 = vsel %vm56_vm1, %v1489_v20, %v2607_v25 }
 0xa09   :  { %2511 = vmatmul.mubr.msk.f32.vlgmr.msra.gmra.mxu0 %vm49_vm2, %v1177_v26 }
 0xa0a   :  { %2519 = vmatpush3.msk.msra.mxu0 %vm56_vm1, %v2806_v54  ;;  %2520 = vmatprep.mubr.msk.f32.mxu0 %vm2680_vm0, %v2679_v0 }
 0xa0b   :  { %2528 = vmatprep.subr.msk.mxu0 %vm56_vm1, %v2355_v46 }
 0xac9   :  { %v1246_v28 = vpop.f32.mrf.mxu0 }
 0xaca   :  { %v1250_v29 = vadd.f32 %v1246_v28, %v2828_v2 }
 0xacb   :  { %v2512_v30 = vpop.f32.mrf.mxu0 }
 0xacc   :  { %2608 = vtanh.f32 %v1250_v29 }
 0xad9   :  { %v2609_v31 = vpop.eup %2608 }
 0xada   :  { %2516 = vmatmul.mubr.msk.f32.vlgmr.msra.gmra.mxu1 %vm49_vm2, %v2609_v31 }
 0xadb   :  { %2524 = vmatpush3.msk.msra.mxu1 %vm56_vm1, %v2806_v54  ;;  %2525 = vmatprep.mubr.msk.f32.mxu1 %vm2680_vm0, %v2679_v0 }
 0xadc   :  { %2533 = vmatprep.subr.mxu1 %v2679_v0 }
 0xb9a   :  { %v1321_v32 = vpop.f32.mrf.mxu1 }
 0xb9b   :  { %v1326_v33 = vrot.slane %v1321_v32, 6 }
 0xb9c   :  { %v2517_v34 = vpop.f32.mrf.mxu1 }
 0xb9d   :  { %v1328_v35 = vadd.f32 %v1326_v33, %v2828_v2  ;;  %v2213_v34 = vld [vmem:[%s2954_s4] sm:$0x3f]  ;;  %s2652_s4 = scalar_lea.vmem %s2307_s21, 32 }
 0xb9e   :  { %p2653_p5 = scmp.ne.s32.totalorder %s2307_s21, %s2652_s4  ;;  %p2658_p7 = scmp.lt.s32.totalorder %s2652_s4, %s2652_s4 }
 0xb9f   :  { %2610 = vtanh.f32 %v1328_v35 }
 0xba0   :  { %p2659_p8 = por %p2658_p7, %p2657_p6 }
 0xba2   :  { %p2660_p9 = pnand %p2659_p8, %p2653_p5 }
 0xbac   :  { %v2611_v36 = vpop.eup %2610 }
 0xbad   :  { %v1331_v37 = vrot.slane %v2611_v36, 2  ;;  %v1491_v43 = vsel %vm761_vm3, %v2609_v31, %v2611_v36 }
 0xbaf   :  { %2521 = vmatmul.mubr.msk.f32.vlgmr.msra.gmra.mxu0 %vm49_vm2, %v1331_v37 }
 0xbb0   :  { %2530 = vmatprep.mubr.msk.f32.mxu0 %vm49_vm2, %v1490_v27  ;;  %2529 = vmatpush3.msk.msra.mxu0 %vm56_vm1, %v2355_v46 }
 0xbb1   :  { %2538 = vmatprep.subr.mxu0 %v2679_v0 }
 0xc6f   :  { %v1400_v38 = vpop.f32.mrf.mxu0 }
 0xc70   :  { %v1405_v39 = vrot.slane %v1400_v38, 4 }
 0xc71   :  { %v2522_v40 = vpop.f32.mrf.mxu0 }
 0xc72   :  { %v1407_v41 = vadd.f32 %v1405_v39, %v2828_v2  ;;  %v2376_v40 = vld [vmem:[%s2955_s5] ss:$0 sm:$0xff] }
 0xc74   :  { %2612 = vtanh.f32 %v1407_v41 }
 0xc81   :  { %v2613_v42 = vpop.eup %2612 }
 0xc82   :  { %v1410_v44 = vrot.slane %v2613_v42, 4  ;;  %v1492_v45 = vsel %vm763_vm4, %v1491_v43, %v2613_v42 }
 0xc84   :  { %2526 = vmatmul.mubr.msk.f32.vlgmr.msra.gmra.mxu1 %vm49_vm2, %v1410_v44 }
 0xc85   :  { %2535 = vmatprep.mubr.msk.f32.mxu1 %vm2680_vm0, %v2679_v0  ;;  %2534 = vmatpush3.msk.msra.mxu1 %vm56_vm1, %v2878_v47 }
 0xc86   :  { %2543 = vmatprep.subr.mxu1 %v2679_v0 }
 0xc88   :  { %2536 = vmatmul.mubr.f32.vlgmr.msra.gmra.mxu1 %v2679_v0 }
 0xc89   :  { %2544 = vmatpush3.msk.msra.mxu1 %vm56_vm1, %v2878_v47  ;;  %2545 = vmatprep.mubr.msk.f32.mxu1 %vm2680_vm0, %v2679_v0 }
 0xc8a   :  { %2553 = vmatprep.subr.mxu1 %v2679_v0 }
 0xd44   :  { %v1479_v48 = vpop.f32.mrf.mxu1 }
 0xd45   :  { %v1484_v49 = vrot.slane %v1479_v48, 2 }
 0xd46   :  { %v2527_v50 = vpop.f32.mrf.mxu1 }
 0xd47   :  { %v1486_v51 = vadd.f32 %v1484_v49, %v2828_v2 }
 0xd48   :  { %v1659_v54 = vpop.f32.mrf.mxu1 }
 0xd49   :  { %2614 = vtanh.f32 %v1486_v51 }
 0xd4a   :  { %v2537_v55 = vpop.f32.mrf.mxu1 }
 0xd56   :  { %v2615_v52 = vpop.eup %2614 }
 0xd57   :  { %v1493_v53 = vsel %vm56_vm1, %v1492_v45, %v2615_v52 }
 0xd58   :  { %2531 = vmatmul.mubr.msk.f32.vlgmr.msra.gmra.mxu0 %vm49_vm2, %v1493_v53 }
 0xd59   :  { %2539 = vmatpush3.msk.msra.mxu0 %vm56_vm1, %v2878_v47  ;;  %2540 = vmatprep.mubr.msk.f32.mxu0 %vm2680_vm0, %v2679_v0 }
 0xd5a   :  { %2548 = vmatprep.subr.mxu0 %v2679_v0 }
 0xe18   :  { %v2532_v57 = vpop.f32.mrf.mxu0 }
 0xe19   :  { %v2900_v58 = vadd.f32 %v2532_v57, %v2357_v56 }
 0xe1a   :  { %v1581_v59 = vpop.f32.mrf.mxu0 }
 0xe1b   :  { %v1582_v60 = vadd.f32 %v2357_v56, %v1581_v59 }
 0xe1d   :  { %v1663_v61 = vadd.f32 %v1659_v54, %v1582_v60 }
 0xe1f   :  { %2616 = vtanh.f32 %v1663_v61 }
 0xe2c   :  { %v2617_v62 = vpop.eup %2616 }
 0xe2d   :  { %2541 = vmatmul.mubr.msk.f32.vlgmr.msra.gmra.mxu0 %vm49_vm2, %v2617_v62 }
 0xe2e   :  { %2549 = vmatpush3.msk.msra.mxu0 %vm56_vm1, %v2878_v47  ;;  %2550 = vmatprep.mubr.msk.f32.mxu0 %vm2680_vm0, %v2679_v0 }
 0xe2f   :  { %2558 = vmatprep.subr.mxu0 %v2679_v0 }
 0xeed   :  { %v1734_v63 = vpop.f32.mrf.mxu0 }
 0xeee   :  { %v1739_v1 = vrot.slane %v1734_v63, 6 }
 0xeef   :  { %v2542_v2 = vpop.f32.mrf.mxu0 }
 0xef0   :  { %v1741_v3 = vadd.f32 %v1739_v1, %v1582_v60 }
 0xef2   :  { %2618 = vtanh.f32 %v1741_v3 }
 0xeff   :  { %v2619_v4 = vpop.eup %2618 }
 0xf00   :  { %v1744_v5 = vrot.slane %v2619_v4, 2 }
 0xf02   :  { %2546 = vmatmul.mubr.msk.f32.vlgmr.msra.gmra.mxu1 %vm49_vm2, %v1744_v5 }
 0xf03   :  { %2554 = vmatpush3.msk.msra.mxu1 %vm56_vm1, %v2878_v47  ;;  %2555 = vmatprep.mubr.msk.f32.mxu1 %vm2680_vm0, %v2679_v0 }
 0xf04   :  { %2563 = vmatprep.subr.mxu1 %v2679_v0 }
 0xfc2   :  { %v1813_v6 = vpop.f32.mrf.mxu1 }
 0xfc3   :  { %v1818_v7 = vrot.slane %v1813_v6, 4 }
 0xfc4   :  { %v2547_v8 = vpop.f32.mrf.mxu1 }
 0xfc5   :  { %v1820_v9 = vadd.f32 %v1818_v7, %v1582_v60 }
 0xfc7   :  { %2620 = vtanh.f32 %v1820_v9 }
 0xfd4   :  { %v2621_v10 = vpop.eup %2620 }
 0xfd5   :  { %v1823_v11 = vrot.slane %v2621_v10, 4 }
 0xfd7   :  { %2551 = vmatmul.mubr.msk.f32.vlgmr.msra.gmra.mxu0 %vm49_vm2, %v1823_v11 }
 0xfd8   :  { %2559 = vmatpush3.msk.msra.mxu0 %vm56_vm1, %v2878_v47  ;;  %2560 = vmatprep.mubr.msk.f32.mxu0 %vm2680_vm0, %v2679_v0 }
 0xfd9   :  { %2568 = vmatprep.subr.mxu0 %v2679_v0 }
0x1097   :  { %v1892_v12 = vpop.f32.mrf.mxu0 }
0x1098   :  { %v1897_v13 = vrot.slane %v1892_v12, 2 }
0x1099   :  { %v2552_v14 = vpop.f32.mrf.mxu0 }
0x109a   :  { %v1899_v15 = vadd.f32 %v1897_v13, %v1582_v60 }
0x109c   :  { %2622 = vtanh.f32 %v1899_v15 }
0x10a9   :  { %v2623_v16 = vpop.eup %2622 }
0x10aa   :  { %v1902_v17 = vrot.slane %v2623_v16, 6 }
0x10ac   :  { %2556 = vmatmul.mubr.msk.f32.vlgmr.msra.gmra.mxu1 %vm49_vm2, %v1902_v17 }
0x10ad   :  { %2564 = vmatpush3.msk.msra.mxu1 %vm56_vm1, %v2878_v47  ;;  %2565 = vmatprep.mubr.msk.f32.mxu1 %vm2680_vm0, %v2679_v0 }
0x10ae   :  { %2573 = vmatprep.subr.mxu1 %v2679_v0 }
0x116c   :  { %v1971_v18 = vpop.f32.mrf.mxu1 }
0x116d   :  { %v1975_v19 = vadd.f32 %v1971_v18, %v2900_v58 }
0x116e   :  { %v2557_v20 = vpop.f32.mrf.mxu1 }
0x116f   :  { %2624 = vtanh.f32 %v1975_v19 }
0x117c   :  { %v2625_v21 = vpop.eup %2624 }
0x117d   :  { %2561 = vmatmul.mubr.msk.f32.vlgmr.msra.gmra.mxu0 %vm49_vm2, %v2625_v21 }
0x117e   :  { %2569 = vmatpush3.msk.msra.mxu0 %vm56_vm1, %v2878_v47  ;;  %2570 = vmatprep.mubr.msk.f32.mxu0 %vm2680_vm0, %v2679_v0 }
0x123d   :  { %v2046_v22 = vpop.f32.mrf.mxu0 }
0x123e   :  { %v2051_v23 = vrot.slane %v2046_v22, 6 }
0x123f   :  { %v2562_v24 = vpop.f32.mrf.mxu0 }
0x1240   :  { %v2053_v25 = vadd.f32 %v2051_v23, %v2900_v58 }
0x1242   :  { %2626 = vtanh.f32 %v2053_v25 }
0x124f   :  { %v2627_v26 = vpop.eup %2626 }
0x1250   :  { %v2056_v27 = vrot.slane %v2627_v26, 2 }
0x1252   :  { %2566 = vmatmul.mubr.msk.f32.vlgmr.msra.gmra.mxu1 %vm49_vm2, %v2056_v27 }
0x1253   :  { %2575 = vmatprep.mubr.msk.f32.mxu1 %vm2680_vm0, %v2679_v0  ;;  %2574 = vmatpush3.msk.msra.mxu1 %vm56_vm1, %v2213_v34 }
0x1312   :  { %v2125_v28 = vpop.f32.mrf.mxu1 }
0x1313   :  { %v2130_v29 = vrot.slane %v2125_v28, 4 }
0x1314   :  { %v2567_v30 = vpop.f32.mrf.mxu1 }
0x1315   :  { %v2132_v31 = vadd.f32 %v2130_v29, %v2900_v58 }
0x1317   :  { %2628 = vtanh.f32 %v2132_v31 }
0x1324   :  { %v2629_v32 = vpop.eup %2628 }
0x1325   :  { %v2135_v33 = vrot.slane %v2629_v32, 4 }
0x1327   :  { %2571 = vmatmul.mubr.msk.f32.vlgmr.msra.gmra.mxu0 %vm49_vm2, %v2135_v33 }
0x13e7   :  { %v2204_v35 = vpop.f32.mrf.mxu0 }
0x13e8   :  { %v2209_v36 = vrot.slane %v2204_v35, 2 }
0x13e9   :  { %v2572_v37 = vpop.f32.mrf.mxu0 }
0x13ea   :  { %v2211_v0 = vadd.f32 %v2209_v36, %v2900_v58 }
0x13ec   :  { %2630 = vtanh.f32 %v2211_v0 }
0x13f9   :  { %v2631_v38 = vpop.eup %2630 }
0x13fa   :  { %v2222_v39 = vrot.slane %v2631_v38, 6 }
0x13fc   :  { %2576 = vmatmul.mubr.msk.f32.vlgmr.msra.gmra.mxu1 %vm49_vm2, %v2222_v39 }
0x14bc   :  { %v2294_v41 = vpop.f32.mrf.mxu1 }
0x14bd   :  { %v2295_v42 = vadd.f32 %v2376_v40, %v2294_v41 }
0x14be   :  { %v2577_v43 = vpop.f32.mrf.mxu1 }
0x14bf   :  { %2299 = vst.msk [vmem:[#allocation5] sm:$0x3] %vm2298_vm5, %v2295_v42 }
0x14c0   :  { %2663 = shalt.err (!%p2660_p9)
}
0x14c1   :  { %2309 = dma.vmem_to_hbm [thread:$0]  %s2307_s21, 32, %s2956_s6, [#allocation4]  }
0x14c2   :  { %2674 = dma.done.wait [#allocation4], 32  }
0x14c3   :  { %2675 = vsyncadd [#allocation4], 4294967264 }
0x14c4   :  { %2313 = vsyncpa [#allocation3], 1 }
0x14c5   :  { %2314 = vsyncpa [#allocation4], 1 }

</bundles_post_ra>
